<compile_context>
chip_gen: v7x
topology: tpu7x:2x2x1
jax: 0.10.0
libtpu: 0.0.40
codegen_flags: <defaults>
</compile_context>

<pallas_src>
import numpy as np
import jax
import jax.numpy as jnp
from jax import lax
from jax.experimental import pallas as pl
from jax.experimental.pallas import tpu as pltpu


COMPUTE_DTYPE = jnp.bfloat16        # matmul-input dtype (f32 accumulation); jnp.float32 also works
TILE_M_MAX = 1024                   # frames per grid step; <=1024 keeps v7x (64 MiB/TC) comfortable
VMEM_LIMIT_BYTES = 48 * 1024 * 1024


def _cdiv(a, b):
    return -(-a // b)


# ----------------------------- Pallas kernel --------------------------------

def _stft_mag_kernel(slab_ref, ba_ref, bb_ref, out_ref):
    # slab_ref: (1, 1, hop, tm+1)  transposed hop-chunks; column f = chunk (tile_start + f)
    # ba_ref:   (2n, hop)          packed fused basis, K rows [0, hop)    (resident)
    # bb_ref:   (2n, hop)          packed fused basis, K rows [hop, L)    (resident)
    # out_ref:  (1, n+1, tm)       (cutoff, tm) block of the (B, cutoff, T) output
    #
    # Packed basis row layout (n = L//2):
    #   rows [0, n)  : real basis bins 0..n-1
    #   row  n       : real basis bin n (Nyquist), stored in the all-zero imag-bin-0 slot
    #   rows (n, 2n) : imag basis bins 1..n-1
    n = out_ref.shape[1] - 1
    tm = out_ref.shape[2]

    x_full = slab_ref[0, 0]                    # (hop, tm+1)
    xa = x_full[:, 0:tm]                       # frame left halves  (chunk f)
    xb = x_full[:, 1:tm + 1]                   # frame right halves (chunk f+1)

    # split-K conv-as-matmul, already in frequency-major orientation (MXU, f32 accumulation)
    acc = jnp.dot(ba_ref[...], xa, preferred_element_type=jnp.float32)
    acc = acc + jnp.dot(bb_ref[...], xb, preferred_element_type=jnp.float32)   # (2n, tm)

    real = acc[0:n, :]                         # real responses, bins 0..n-1
    imagx = acc[n:2 * n, :]                    # row 0 = Nyquist real; rows 1.. = imag bins 1..n-1

    # Row 0 of `imagx` is NOT bin 0's imaginary part (which is identically zero) -> mask it.
    row = lax.broadcasted_iota(jnp.int32, (n, tm), 0)
    imag_only = jnp.where(row == 0, 0.0, imagx)

    mag = jnp.sqrt(real * real + imag_only * imag_only)                 # bins 0..n-1
    out_ref[0, 0:n, :] = mag.astype(out_ref.dtype)
    # Nyquist bin (its imaginary part is identically zero): |real response|
    out_ref[0, n:n + 1, :] = jnp.abs(imagx[0:1, :]).astype(out_ref.dtype)


# --------------------------- Parameter construction --------------------------

def _hann_periodic(win_len):
    # scipy.signal.get_window('hann', n, fftbins=True) -> periodic Hann
    k = np.arange(win_len)
    return 0.5 - 0.5 * np.cos(2.0 * np.pi * k / win_len)


def make_forward_basis(filter_length, hop_length, window="hann", win_length=None,
                       compute_dtype=COMPUTE_DTYPE):
    """Packed, K-split, frequency-major forward basis: returns (basis_a, basis_b, cutoff),
    basis_* of shape (2n, hop) with n = filter_length // 2 (no zero-column padding)."""
    L = filter_length
    assert L % 16 == 0, "filter_length must be a multiple of 16"
    assert 2 * hop_length == L, \
        "TODO(synk): only 50% overlap (hop == filter_length/2) is implemented"
    n = L // 2
    cutoff = n + 1
    win_length = win_length if win_length else L
    assert L >= win_length

    fourier = np.fft.fft(np.eye(L))                        # [k, j] = exp(-2*pi*i*k*j/L)
    real_b = np.real(fourier[:cutoff, :])
    imag_b = np.imag(fourier[:cutoff, :])

    if window == "hann":
        w = _hann_periodic(win_length)
    else:
        # TODO(synk): only the module-default 'hann' window is implemented in this script.
        raise NotImplementedError("only 'hann' window implemented")
    pad_total = L - win_length                             # pad_center
    w = np.pad(w, (pad_total // 2, pad_total - pad_total // 2))

    real_b = real_b * w[None, :]
    imag_b = imag_b * w[None, :]

    fused = np.zeros((2 * n, L), dtype=np.float32)
    fused[0:n, :] = real_b[0:n, :]
    fused[n, :] = real_b[n, :]            # Nyquist real packed into the zero imag-bin-0 slot
    fused[n + 1:2 * n, :] = imag_b[1:n, :]

    hop = hop_length
    basis_a = jnp.asarray(fused[:, :hop], dtype=compute_dtype)
    basis_b = jnp.asarray(fused[:, hop:], dtype=compute_dtype)
    return basis_a, basis_b, cutoff


# ------------------------------- Forward pass --------------------------------

def _pick_tile_m(num_frames, tile_m_max):
    """Frames per grid step: multiple of 256 (lane-dense + MXU M/N block friendly),
    minimal total padding, as large as possible, <= tile_m_max."""
    cands = list(range(256, max(tile_m_max, 256) + 1, 256))
    fits = [c for c in cands if c <= num_frames]
    if not fits:
        return cands[0]
    return min(fits, key=lambda c: (_cdiv(num_frames, c) * c, -c))


def stft_magnitude(x, basis_a, basis_b, *, filter_length, hop_length,
                   compute_dtype=COMPUTE_DTYPE, out_dtype=jnp.float32,
                   tile_m_max=TILE_M_MAX):
    """x: (B, num_samples) float32 -> magnitude (B, cutoff, num_frames)."""
    B, num_samples = x.shape
    L = filter_length
    hop = hop_length
    assert L % 16 == 0, "filter_length must be a multiple of 16"
    assert 2 * hop == L, \
        "TODO(synk): only 50% overlap (hop == filter_length/2) is implemented"
    n = L // 2
    cutoff = n + 1
    assert basis_a.shape == (2 * n, hop) and basis_b.shape == (2 * n, hop)

    # 1) reflect pad (matches F.pad(..., mode='reflect') on the sample axis)
    pad = L // 2
    xp = jnp.pad(x, ((0, 0), (pad, pad)), mode="reflect")
    P = xp.shape[1]
    T = (P - L) // hop + 1                       # frames produced by conv1d(stride=hop)

    # 2) frame-tile size and grid extents
    tm = _pick_tile_m(T, tile_m_max)
    nt = _cdiv(T, tm)
    t_padded = nt * tm

    # 3) de-duplicated, transposed chunk slabs: tile (b, i) holds chunks
    #    [i*tm, i*tm + tm] (inclusive) as the columns of a (hop, tm+1) block, so adjacent
    #    tiles share exactly one chunk instead of duplicating every chunk twice.
    need = (t_padded + 1) * hop
    if P < need:
        xp = jnp.pad(xp, ((0, 0), (0, need - P)))
    xp = xp[:, :need]
    chunks = xp.reshape(B, t_padded + 1, hop)                                     # (B, T_pad+1, hop)
    main_t = jnp.swapaxes(chunks[:, :t_padded, :].reshape(B, nt, tm, hop), 2, 3)  # (B, nt, hop, tm)
    extra_t = chunks[:, tm::tm, :][:, :, :, None]                                 # (B, nt, hop, 1)
    slab = jnp.concatenate([main_t, extra_t], axis=3).astype(compute_dtype)       # (B, nt, hop, tm+1)

    # 4) output written directly as (B, cutoff, T): lane-dense (cutoff, tm) blocks, no
    #    post-hoc transpose.  Only when T < tm do we pad the frame axis and slice after.
    if tm <= T:
        t_out, need_slice = T, False        # partial last block handled by Pallas clipping
    else:
        t_out, need_slice = tm, True        # tiny inputs: cheap slice of a tiny output

    bytes_accessed = (slab.size * slab.dtype.itemsize
                      + basis_a.size * basis_a.dtype.itemsize
                      + basis_b.size * basis_b.dtype.itemsize
                      + B * cutoff * t_out * np.dtype(out_dtype).itemsize)

    mag = pl.pallas_call(
        _stft_mag_kernel,
        out_shape=jax.ShapeDtypeStruct((B, cutoff, t_out), out_dtype),
        grid_spec=pltpu.PrefetchScalarGridSpec(
            num_scalar_prefetch=0,
            grid=(B, nt),
            in_specs=[
                pl.BlockSpec((1, 1, hop, tm + 1), lambda b, i: (b, i, 0, 0)),
                pl.BlockSpec((2 * n, hop), lambda b, i: (0, 0)),   # resident basis (K rows [0, hop))
                pl.BlockSpec((2 * n, hop), lambda b, i: (0, 0)),   # resident basis (K rows [hop, L))
            ],
            out_specs=pl.BlockSpec((1, cutoff, tm), lambda b, i: (b, 0, i)),
        ),
        compiler_params=pltpu.CompilerParams(
            dimension_semantics=("parallel", "parallel"),   # independent (batch, tile) -> megacore
            vmem_limit_bytes=VMEM_LIMIT_BYTES,
        ),
        cost_estimate=pl.CostEstimate(
            flops=2 * B * nt * tm * L * 2 * n,
            transcendentals=B * nt * tm * cutoff,
            bytes_accessed=int(bytes_accessed),
        ),
    )(slab, basis_a, basis_b)

    if need_slice:
        mag = mag[:, :, :T]
    return mag


# ------------------------------- NumPy reference ------------------------------

def _reference_magnitude_f64(x_np, filter_length, hop_length, window="hann", win_length=None):
    """Float64 reference with the exact PyTorch STFT.forward semantics
    (reflect pad -> conv1d with the windowed Fourier basis -> magnitude)."""
    L = filter_length
    hop = hop_length
    cutoff = L // 2 + 1
    win_length = win_length if win_length else L
    w = _hann_periodic(win_length)
    pad_total = L - win_length
    w = np.pad(w, (pad_total // 2, pad_total - pad_total // 2))
    fourier = np.fft.fft(np.eye(L))
    fb = np.vstack([np.real(fourier[:cutoff, :]), np.imag(fourier[:cutoff, :])]) * w[None, :]
    pad = L // 2
    xp = np.pad(x_np.astype(np.float64), ((0, 0), (pad, pad)), mode="reflect")
    T = (xp.shape[1] - L) // hop + 1
    frames = np.stack([xp[:, t * hop:t * hop + L] for t in range(T)], axis=1)   # (B, T, L)
    resp = np.einsum("btl,cl->bct", frames, fb)                                 # (B, 2*cutoff, T)
    real = resp[:, :cutoff, :]
    imag = resp[:, cutoff:, :]
    return np.sqrt(real * real + imag * imag)


# ----------------------------------- Main ------------------------------------

if __name__ == "__main__":
    # Small deterministic config (module default is 1024/512; scaled down, keeping the
    # module's 50%-overlap restriction: hop = filter_length / 2).
    filter_length = 64
    hop_length = 32
    B = 2
    num_samples = 256

    key = jax.random.PRNGKey(0)
    x = jax.random.normal(key, (B, num_samples), dtype=jnp.float32)

    # true-semantics reference (float64)
    ref = _reference_magnitude_f64(np.asarray(x), filter_length, hop_length)

    pad = filter_length // 2
    T = (num_samples + 2 * pad - filter_length) // hop_length + 1

    # run both the bf16 (default) and the f32 compute path; the tolerance is sized for
    # bf16 matmul inputs (low-magnitude bins have larger relative error -> atol dominates).
    for cdt in (jnp.bfloat16, jnp.float32):
        ba, bb, cutoff = make_forward_basis(filter_length, hop_length, compute_dtype=cdt)
        mag = stft_magnitude(
            x, ba, bb,
            filter_length=filter_length, hop_length=hop_length,
            compute_dtype=cdt, out_dtype=jnp.float32)
        mag = jax.block_until_ready(mag)

        assert mag.shape == (B, cutoff, T), (mag.shape, (B, cutoff, T))
        assert bool(jnp.all(jnp.isfinite(mag)))
        np.testing.assert_allclose(np.asarray(mag), ref, rtol=5e-2, atol=1.5e-1)

    print("KERNEL_OK")
</pallas_src>

<mosaic_0001>
module attributes {stable_mosaic.version = 11 : i64} {
  func.func @_stft_mag_kernel(%arg0: i32, %arg1: i32, %arg2: memref<1x1x32x257xbf16, #tpu.memory_space<vmem>>, %arg3: memref<64x32xbf16, #tpu.memory_space<vmem>>, %arg4: memref<64x32xbf16, #tpu.memory_space<vmem>>, %arg5: memref<1x33x256xf32, #tpu.memory_space<vmem>>) attributes {dimension_semantics = [#tpu.dimension_semantics<parallel>, #tpu.dimension_semantics<parallel>], iteration_bounds = array<i64: 2, 1>, scalar_prefetch = 0 : i64, scratch_operands = 0 : i64, tpu.core_type = #tpu.core_type<tc>, window_params = [{transform_indices = @transform_0, window_bounds = array<i64: 1, 1, 32, 257>}, {pipeline_mode = #tpu.pipeline_mode<synchronous>, transform_indices = @transform_1, window_bounds = array<i64: 64, 32>}, {pipeline_mode = #tpu.pipeline_mode<synchronous>, transform_indices = @transform_2, window_bounds = array<i64: 64, 32>}, {transform_indices = @transform_3, window_bounds = array<i64: 1, 33, 256>}]} {
    %c0 = arith.constant 0 : index
    %c0_0 = arith.constant 0 : index
    %c0_1 = arith.constant 0 : index
    %c0_2 = arith.constant 0 : index
    %0 = vector.load %arg2[%c0, %c0_0, %c0_1, %c0_2] : memref<1x1x32x257xbf16, #tpu.memory_space<vmem>>, vector<1x1x32x257xbf16>
    %1 = vector.shape_cast %0 : vector<1x1x32x257xbf16> to vector<32x257xbf16>
    %2 = vector.extract_strided_slice %1 {offsets = [0, 0], sizes = [32, 256], strides = [1, 1]} : vector<32x257xbf16> to vector<32x256xbf16>
    %3 = vector.extract_strided_slice %1 {offsets = [0, 1], sizes = [32, 256], strides = [1, 1]} : vector<32x257xbf16> to vector<32x256xbf16>
    %c0_3 = arith.constant 0 : index
    %c0_4 = arith.constant 0 : index
    %4 = vector.load %arg3[%c0_3, %c0_4] : memref<64x32xbf16, #tpu.memory_space<vmem>>, vector<64x32xbf16>
    %cst = arith.constant dense<0.000000e+00> : vector<64x256xf32>
    %5 = tpu.matmul %4, %2, %cst {dimension_numbers = #tpu.dot_dimension_numbers<[1], [0], [0], [1], [0, 0, 1, 1], [], []>} : vector<64x32xbf16>, vector<32x256xbf16>, vector<64x256xf32> -> vector<64x256xf32>
    %c0_5 = arith.constant 0 : index
    %c0_6 = arith.constant 0 : index
    %6 = vector.load %arg4[%c0_5, %c0_6] : memref<64x32xbf16, #tpu.memory_space<vmem>>, vector<64x32xbf16>
    %cst_7 = arith.constant dense<0.000000e+00> : vector<64x256xf32>
    %7 = tpu.matmul %6, %3, %cst_7 {dimension_numbers = #tpu.dot_dimension_numbers<[1], [0], [0], [1], [0, 0, 1, 1], [], []>} : vector<64x32xbf16>, vector<32x256xbf16>, vector<64x256xf32> -> vector<64x256xf32>
    %8 = arith.addf %5, %7 : vector<64x256xf32>
    %9 = vector.extract_strided_slice %8 {offsets = [0, 0], sizes = [32, 256], strides = [1, 1]} : vector<64x256xf32> to vector<32x256xf32>
    %10 = vector.extract_strided_slice %8 {offsets = [32, 0], sizes = [32, 256], strides = [1, 1]} : vector<64x256xf32> to vector<32x256xf32>
    %11 = tpu.iota {dimensions = array<i32: 0>} : vector<32x256xi32>
    %c0_i32 = arith.constant 0 : i32
    %12 = vector.broadcast %c0_i32 : i32 to vector<32x256xi32>
    %13 = arith.cmpi eq, %11, %12 : vector<32x256xi32>
    %cst_8 = arith.constant 0.000000e+00 : f32
    %14 = vector.broadcast %cst_8 : f32 to vector<32x256xf32>
    %15 = arith.select %13, %14, %10 : vector<32x256xi1>, vector<32x256xf32>
    %16 = arith.mulf %9, %9 : vector<32x256xf32>
    %17 = arith.mulf %15, %15 : vector<32x256xf32>
    %18 = arith.addf %16, %17 : vector<32x256xf32>
    %19 = math.sqrt %18 : vector<32x256xf32>
    %c0_9 = arith.constant 0 : index
    %c0_10 = arith.constant 0 : index
    %c0_11 = arith.constant 0 : index
    %20 = vector.load %arg5[%c0_9, %c0_10, %c0_11] : memref<1x33x256xf32, #tpu.memory_space<vmem>>, vector<1x32x256xf32>
    %21 = vector.shape_cast %20 : vector<1x32x256xf32> to vector<32x256xf32>
    %22 = vector.shape_cast %19 : vector<32x256xf32> to vector<1x32x256xf32>
    tpu.vector_store %arg5[%c0_9, %c0_10, %c0_11], %22 {strides = array<i32>} : memref<1x33x256xf32, #tpu.memory_space<vmem>>, vector<1x32x256xf32>,
    %23 = vector.extract_strided_slice %10 {offsets = [0, 0], sizes = [1, 256], strides = [1, 1]} : vector<32x256xf32> to vector<1x256xf32>
    %24 = math.absf %23 : vector<1x256xf32>
    %c0_12 = arith.constant 0 : index
    %c32 = arith.constant 32 : index
    %c0_13 = arith.constant 0 : index
    %25 = vector.load %arg5[%c0_12, %c32, %c0_13] : memref<1x33x256xf32, #tpu.memory_space<vmem>>, vector<1x1x256xf32>
    %26 = vector.shape_cast %25 : vector<1x1x256xf32> to vector<1x256xf32>
    %27 = vector.shape_cast %24 : vector<1x256xf32> to vector<1x1x256xf32>
    tpu.vector_store %arg5[%c0_12, %c32, %c0_13], %27 {strides = array<i32>} : memref<1x33x256xf32, #tpu.memory_space<vmem>>, vector<1x1x256xf32>,
    return
  }
  func.func @transform_0(%arg0: i32, %arg1: i32) -> (i32, i32, i32, i32) {
    %c0_i32 = arith.constant 0 : i32
    %c0_i32_0 = arith.constant 0 : i32
    %c0_i32_1 = arith.constant 0 : i32
    return %arg0, %arg1, %c0_i32, %c0_i32_0 : i32, i32, i32, i32
  }
  func.func @transform_1(%arg0: i32, %arg1: i32) -> (i32, i32) {
    %c0_i32 = arith.constant 0 : i32
    %c0_i32_0 = arith.constant 0 : i32
    %c0_i32_1 = arith.constant 0 : i32
    return %c0_i32, %c0_i32_0 : i32, i32
  }
  func.func @transform_2(%arg0: i32, %arg1: i32) -> (i32, i32) {
    %c0_i32 = arith.constant 0 : i32
    %c0_i32_0 = arith.constant 0 : i32
    %c0_i32_1 = arith.constant 0 : i32
    return %c0_i32, %c0_i32_0 : i32, i32
  }
  func.func @transform_3(%arg0: i32, %arg1: i32) -> (i32, i32, i32) {
    %c0_i32 = arith.constant 0 : i32
    %c0_i32_0 = arith.constant 0 : i32
    return %arg0, %c0_i32, %arg1 : i32, i32, i32
  }
}

</mosaic_0001>

<bundles_post_ra>
// kernel: tpu_custom_call.1
= control target key start
LH: loop header
LB: loop body
LE: loop exit
PB: predicated region body
PF: predicated region fallthrough
CT: control target
= control target key end

     0   :  { %8 = vsyncpa [#allocation3], 0  ;;  %s1176_s0 = inlined_call_operand.hbm [shape: bf16[2,1,32,257], index: 0, kind: input, shape index: {}]   ;;  %s1177_s1 = inlined_call_operand.vmem [shape: bf16[64,32], index: 1, kind: input, shape index: {}]   ;;  %s1178_s2 = inlined_call_operand.vmem [shape: bf16[64,32], index: 2, kind: input, shape index: {}]   ;;  %s1179_s3 = inlined_call_operand.vmem [shape: f32[2,33,256], index: 3, kind: output, shape index: {}]  }
   0x1   :  { %10 = vsyncpa [#allocation3 + $0x1], 0  ;;  %s984_s12 = smov 0   ;;  %s986_s13 = smov 0  }
   0x2   :  { %s988_s14 = smov 0   ;;  %s990_s15 = smov 0  }
   0x3   :  { %s992_s16 = smov 0   ;;  %s994_s17 = smov 0  }
   0x4 LB: > { %s732_s18 = sadd.s32 4294967295, %s956_s17   ;;  %s28_s19 = sadd.s32 1, %s952_s16  ;;  %s956_s17 = sphi %s994_s17, %s16_s17   ;;  %s952_s16 = sphi %s992_s16, %s1186_s16   ;;  %s948_s15 = sphi %s990_s15, %s1185_s15   ;;  %s944_s14 = sphi %s988_s14, %s1184_s14   ;;  %s940_s13 = sphi %s986_s13, %s1183_s13   ;;  %s936_s12 = sphi %s984_s12, %s1182_s12  }
   0x5   : > { %p30_p0 = scmp.ge.s32.totalorder %s28_s19, 2  ;;  %s37_s20 = sadd.s32 1, %s944_s14 }
   0x6   : > { %p44_p1 = scmp.ne.s32.totalorder %s944_s14, %s940_s13  ;;  %p45_p2 = scmp.eq.s32.totalorder %s956_s17, 0 }
   0x7   : > { %s1188_s19 = smov (%p30_p0, %s28_s19), 0  ;;  %p50_p4 = scmp.ne.s32.totalorder %s940_s13, %s936_s12 }
   0x8   : > { %p46_p3 = por %p45_p2, %p44_p1  ;;  %s32_s21 = ssub.s32 %s952_s16, %s1188_s19 }
   0x9   : > { %p51_p5 = scmp.eq.s32.totalorder %s732_s18, 0  ;;  %p35_p6 = scmp.eq.s32.totalorder %s32_s21, 0 }
   0xa   : > { %p790_p8 = scmp.lt.s32.totalorder %s956_s17, 2  ;;  %s150_s24 = sand.u32 1, %s944_s14  }
   0xb   : > { %p1023_p7 = por %p51_p5, %p50_p4  ;;  %s781_s25 = smul.u32 768, %s952_s16 }
   0xc   : > { %s1029_s23 = scalar_select %p35_p6, %s944_s14, %s37_s20  }
   0xd   : > { %s780_s26 = smul.u32 48, %s150_s24  ;;  %s1036_s29 = scalar_lea.hbm %s1176_s0, %s781_s25 }
   0xe   : > { %p1038_p9 = pnand %p790_p8, %p46_p3  ;;  %s1044_s6 = scalar_lea.sflag [#allocation3], %s150_s24 }
   0xf   : > { %s154_s4 = scalar_lea.vmem [#allocation2], %s780_s26  ;;  %s876_s7 = scalar_lea.hbm %s1036_s29, 768 }
  0x10   : > { %s163_s5 = sshll.u32 %s154_s4, 4  ;;  %p877_p10 = scmp.ne.s32.totalorder %s1036_s29, %s876_s7  ;;  %s1042_s5 = int_to_ptr.vmem [resolvable:$true] %s163_s5 }
  0x11   : > { %p878_p11 = pneg %p1038_p9  ;;  %s881_s10 = scalar_lea.hbm %s1176_s0, 1536 }
  0x12   : > { %p882_p0 = scmp.lt.u32.totalorder %s1036_s29, %s1176_s0  ;;  %p883_p1 = scmp.lt.u32.totalorder %s881_s10, %s876_s7 }
  0x13   : > { %p879_p12 = pnand %p878_p11, %p877_p10  ;;  %p885_p3 = scmp.lt.u32.totalorder %s876_s7, %s1036_s29 }
  0x14   : > { %p884_p2 = por %p883_p1, %p882_p0 }
  0x15   : > { %p880_p13 = pneg %p879_p12 }
  0x16   : > { %p886_p4 = por %p885_p3, %p884_p2 }
  0x18   : > { %p887_p5 = pnand %p886_p4, %p880_p13 }
  0x1a   : > { %890 = shalt.err (!%p887_p5)
}
  0x1b   : > { %s891_s18 = scalar_lea.vmem %s1042_s5, 768  ;;  %s958_s20 = smov [#allocation2]  }
  0x1c   : > { %p892_p6 = scmp.ne.s32.totalorder %s1042_s5, %s891_s18  ;;  %s896_s21 = sshll.u32 %s958_s20, 4  ;;  %s897_s21 = int_to_ptr.vmem [resolvable:$false] %s896_s21 }
  0x1d   : > { %s898_s24 = scalar_lea.vmem %s897_s21, 1536  ;;  %p899_p12 = scmp.lt.s32.totalorder %s1042_s5, %s897_s21 }
  0x1e   : > { %p894_p8 = pnand %p892_p6, %p878_p11  ;;  %p900_p0 = scmp.lt.s32.totalorder %s898_s24, %s891_s18 }
  0x20   : > { %p895_p10 = pneg %p894_p8  ;;  %p901_p1 = por %p900_p0, %p899_p12 }
  0x22   : > { %p902_p2 = pnand %p901_p1, %p895_p10 }
  0x24   : > { %905 = shalt.err (!%p902_p2)
}
  0x25   : > { %s959_s25 = smov 192   ;;  %s960_s26 = smov 12  }
  0x26   : > { %789 = dma.hbm_to_vmem [thread:$0]  (!%p1038_p9), %s1036_s29, 768, %s1042_s5, %s1044_s6, %s959_s25, %s959_s25, %s960_s26  }
  0x27   : > { %p737_p11 = scmp.ge.s32.totalorder %s956_s17, 1  ;;  %p171_p13 = scmp.lt.s32.totalorder %s956_s17, 3 }
  0x29   : > { %p172_p3 = pnand %p737_p11, %p171_p13 }
  0x2a   : > { %s177_s27 = sand.u32 (!%p172_p3), 1, %s940_s13  }
  0x2b   : > { %175 = sbr.rel (%p172_p3) target bundleno = 442 (0x1ba), region = 32  ;;  %s178_s4 = scalar_lea.sflag (!%p172_p3), [#allocation3], %s177_s27 }
  0x2c   : > { %s782_s28 = smul.u32 (!%p172_p3), 48, %s177_s27 }
  0x2e   : > { %s181_s7 = scalar_lea.vmem (!%p172_p3), [#allocation2], %s782_s28 }
  0x32   : > { %931 = dma.done.wait (%p1023_p7), %s178_s4, 768  }
  0x33   : > { %933 = vsyncadd (%p1023_p7), %s178_s4, 4294966528  ;;  %v961_v0 = vmov 0   ;;  %v844_v1 = vld [vmem:[%s181_s7 + $0x4] ss:$12 sps:$4 sm:$0xff]   ;;  %v846_v2 = vld [vmem:[%s181_s7] ss:$12 sps:$4 sm:$0xff]   ;;  %v505_v50 = vlaneseq }
  0x34   : > { %464 = vmatprep.mubr.bf16.mxu0 %v961_v0  ;;  %355 = vmatprep.mubr.bf16.mxu1 %v961_v0  ;;  %s962_s29 = smov 127   ;;  %v847_v3 = vld [vmem:[%s181_s7 + $0x8] ss:$12 sps:$4 sm:$0xff]   ;;  %v850_v5 = vld [vmem:[%s181_s7 + $0x20] ss:$12 sps:$4 sm:$0xff]   ;;  %vm310_vm0 = vcmask 261120  }
  0x35   : > { %291 = vrot.lane.b32.xlu0 %v844_v1, %s962_s29  ;;  %432 = vmatprep.subr.bf16.mxu0 %v844_v1  ;;  %v848_v4 = vld [vmem:[%s181_s7 + $0x1c] ss:$12 sps:$4 sm:$0xff]   ;;  %v851_v6 = vld [vmem:[%s181_s7 + $0x18] ss:$12 sps:$4 sm:$0xff]   ;;  %vm301_vm1 = vcmask 1039360   ;;  %v506_v58 = vshrl.u32 %v505_v50, 7 }
  0x36   : > { %289 = vrot.lane.b32.xlu1 %v846_v2, %s962_s29  ;;  %433 = vmatpush1.bf16.msra.mxu0 %v846_v2  ;;  %v852_v7 = vld [vmem:[%s1177_s1] sm:$0xff]   ;;  %v854_v8 = vld [vmem:[%s1177_s1 + $0x8] sm:$0xff]   ;;  %v856_v9 = vld [vmem:[%s1177_s1 + $0x10] sm:$0xff]   ;;  %v963_v59 = vmov 1966171168   ;;  %p209_p7 = scmp.lt.s32.totalorder %s948_s15, 1 }
  0x37   : > { %434 = vmatprep.subr.bf16.mxu0 %v848_v4  ;;  %v858_v10 = vld [vmem:[%s1177_s1 + $0x18] sm:$0xff]   ;;  %v853_v21 = vld [vmem:[%s1178_s2] sm:$0xff]   ;;  %v855_v22 = vld [vmem:[%s1178_s2 + $0x8] sm:$0xff]   ;;  %v616_v60 = vunpack.c.l.s4 %v963_v59  ;;  %vm510_vm2 = vcmp.eq.s32.totalorder %v506_v58, 0  ;;  %vm632_vm3 = vcmp.lt.s32.totalorder %v505_v50, 256 }
  0x38   : > { %v857_v23 = vld [vmem:[%s1178_s2 + $0x10] sm:$0xff]   ;;  %v859_v24 = vld [vmem:[%s1178_s2 + $0x18] sm:$0xff]   ;;  %s1190_s15 = smov (!%p209_p7, %s948_s15), 1 }
  0x39   : > { %293 = vrot.lane.b32.xlu0 %v847_v3, %s962_s29  ;;  %s783_s28 = smul.u32 80, %s1190_s15 }
  0x3a   : > { %297 = vrot.lane.b32.xlu1 %v848_v4, %s962_s29  ;;  %435 = vmatpush1.bf16.msra.mxu0 %v851_v6 }
  0x3d   : > { %299 = vrot.lane.b32.xlu0 %v850_v5, %s962_s29  ;;  %757 = vmatmul.mubr.msk.bf16.vlgmr.msra.gmra.mrb[0].mxu0 %vm310_vm0, %v852_v7 }
  0x3e   : > { %295 = vrot.lane.b32.xlu1 %v851_v6, %s962_s29  ;;  %474 = vmatprep.mubr.bf16.mxu0 %v961_v0  ;;  %s1127_s29 = scalar_lea.vmem %s1179_s3, %s783_s28 }
  0x45   : > { %758 = vmatmul.mubr.msk.bf16.gmra.mrb[4].mxu0 %vm310_vm0, %v854_v8 }
  0x46   : > { %484 = vmatprep.mubr.bf16.mxu0 %v961_v0 }
  0x4d   : > { %759 = vmatmul.mubr.msk.bf16.gmra.mrb[8].mxu0 %vm310_vm0, %v856_v9 }
  0x4e   : > { %494 = vmatprep.mubr.bf16.mxu0 %v961_v0 }
  0x55   : > { %760 = vmatmul.mubr.msk.bf16.gmra.mrb[12].mxu0 %vm310_vm0, %v858_v10 }
  0xa7   : > { %v292_v11 = vpop.permute.xlu0 %291 }
  0xa8   : > { %v290_v12 = vpop.permute.xlu1 %289 }
  0xa9   : > { %v302_v16 = vsel %vm301_vm1, %v290_v12, %v292_v11 }
  0xab   : > { %v294_v13 = vpop.permute.xlu0 %293 }
  0xac   : > { %v298_v14 = vpop.permute.xlu1 %297  ;;  %v303_v15 = vsel %vm301_vm1, %v292_v11, %v294_v13 }
  0xad   : > { %323 = vmatprep.subr.bf16.mxu1 %v303_v15 }
  0xae   : > { %324 = vmatpush1.bf16.msra.mxu1 %v302_v16 }
  0xaf   : > { %v300_v17 = vpop.permute.xlu0 %299 }
  0xb0   : > { %v296_v18 = vpop.permute.xlu1 %295  ;;  %v305_v19 = vsel %vm301_vm1, %v298_v14, %v300_v17 }
  0xb1   : > { %325 = vmatprep.subr.bf16.mxu1 %v305_v19  ;;  %v304_v20 = vsel %vm301_vm1, %v296_v18, %v298_v14 }
  0xb2   : > { %326 = vmatpush1.bf16.msra.mxu1 %v304_v20 }
  0xb5   : > { %749 = vmatmul.mubr.msk.bf16.vlgmr.msra.gmra.mrb[0].mxu1 %vm310_vm0, %v853_v21 }
  0xb6   : > { %365 = vmatprep.mubr.bf16.mxu1 %v961_v0 }
  0xbd   : > { %750 = vmatmul.mubr.msk.bf16.gmra.mrb[4].mxu1 %vm310_vm0, %v855_v22 }
  0xbe   : > { %375 = vmatprep.mubr.bf16.mxu1 %v961_v0 }
  0xc5   : > { %751 = vmatmul.mubr.msk.bf16.gmra.mrb[8].mxu1 %vm310_vm0, %v857_v23 }
  0xc6   : > { %385 = vmatprep.mubr.bf16.mxu1 %v961_v0  ;;  %v617_v0 = vunpack.c.0.s8 %v616_v60 }
  0xc8   : > { %v620_v17 = vsub.s32 %v617_v0, %v506_v58 }
  0xcd   : > { %752 = vmatmul.mubr.msk.bf16.gmra.mrb[12].mxu1 %vm310_vm0, %v859_v24 }
 0x110   : > { %v466_v25 = vpop.f32.mrb[0].mxu0 }
 0x111   : > { %v468_v26 = vpop.f32.mrb[1].mxu0 }
 0x112   : > { %v470_v27 = vpop.f32.mrb[2].mxu0 }
 0x113   : > { %v472_v28 = vpop.f32.mrb[3].mxu0 }
 0x118   : > { %v476_v29 = vpop.f32.mrb[4].mxu0 }
 0x119   : > { %v478_v30 = vpop.f32.mrb[5].mxu0 }
 0x11a   : > { %v480_v31 = vpop.f32.mrb[6].mxu0 }
 0x11b   : > { %v482_v32 = vpop.f32.mrb[7].mxu0 }
 0x120   : > { %v486_v33 = vpop.f32.mrb[8].mxu0 }
 0x121   : > { %v488_v34 = vpop.f32.mrb[9].mxu0 }
 0x122   : > { %v490_v35 = vpop.f32.mrb[10].mxu0 }
 0x123   : > { %v492_v36 = vpop.f32.mrb[11].mxu0 }
 0x128   : > { %v1111_v37 = vpop.f32.mrb[12].mxu0 }
 0x129   : > { %v1113_v38 = vpop.f32.mrb[13].mxu0 }
 0x12a   : > { %v1115_v39 = vpop.f32.mrb[14].mxu0 }
 0x12b   : > { %v1117_v40 = vpop.f32.mrb[15].mxu0 }
 0x188   : > { %v357_v41 = vpop.f32.mrb[0].mxu1 }
 0x189   : > { %v467_v42 = vadd.f32 %v466_v25, %v357_v41  ;;  %v359_v43 = vpop.f32.mrb[1].mxu1 }
 0x18a   : > { %v469_v44 = vadd.f32 %v468_v26, %v359_v43  ;;  %v361_v45 = vpop.f32.mrb[2].mxu1 }
 0x18b   : > { %v471_v46 = vadd.f32 %v470_v27, %v361_v45  ;;  %v363_v47 = vpop.f32.mrb[3].mxu1  ;;  %v522_v3 = vmul.f32 %v467_v42, %v467_v42 }
 0x18c   : > { %v473_v48 = vadd.f32 %v472_v28, %v363_v47  ;;  %v523_v12 = vmul.f32 %v469_v44, %v469_v44 }
 0x18d   : > { %v524_v13 = vmul.f32 %v471_v46, %v471_v46 }
 0x18e   : > { %v525_v23 = vmul.f32 %v473_v48, %v473_v48 }
 0x190   : > { %v367_v49 = vpop.f32.mrb[4].mxu1 }
 0x191   : > { %v477_v51 = vadd.f32 %v476_v29, %v367_v49  ;;  %v369_v52 = vpop.f32.mrb[5].mxu1 }
 0x192   : > { %v479_v53 = vadd.f32 %v478_v30, %v369_v52  ;;  %v371_v54 = vpop.f32.mrb[6].mxu1 }
 0x193   : > { %v481_v55 = vadd.f32 %v480_v31, %v371_v54  ;;  %v373_v56 = vpop.f32.mrb[7].mxu1  ;;  %v526_v31 = vmul.f32 %v477_v51, %v477_v51 }
 0x194   : > { %v483_v57 = vadd.f32 %v482_v32, %v373_v56 }
 0x196   : > { %v529_v41 = vmul.f32 %v483_v57, %v483_v57 }
 0x198   : > { %v377_v61 = vpop.f32.mrb[8].mxu1 }
 0x199   : > { %v487_v62 = vadd.f32 %v486_v33, %v377_v61  ;;  %v379_v63 = vpop.f32.mrb[9].mxu1 }
 0x19a   : > { %v489_v1 = vadd.f32 %v488_v34, %v379_v63  ;;  %v381_v2 = vpop.f32.mrb[10].mxu1 }
 0x19b   : > { %v514_v4 = vsel %vm510_vm2, 0.0, %v487_v62  ;;  %v610_v5 = vand.u32 2147483647, %v487_v62  ;;  %v491_v6 = vadd.f32 %v490_v35, %v381_v2  ;;  %v383_v7 = vpop.f32.mrb[11].mxu1  ;;  %v527_v35 = vmul.f32 %v479_v53, %v479_v53 }
 0x19c   : > { %v530_v8 = vmul.f32 %v514_v4, %v514_v4  ;;  %v515_v9 = vsel %vm510_vm2, 0.0, %v489_v1  ;;  %v611_v10 = vand.u32 2147483647, %v489_v1  ;;  %v493_v11 = vadd.f32 %v492_v36, %v383_v7 }
 0x19d   : > { %v531_v14 = vmul.f32 %v515_v9, %v515_v9  ;;  %v532_v15 = vmul.f32 %v491_v6, %v491_v6  ;;  %v528_v36 = vmul.f32 %v481_v55, %v481_v55 }
 0x19e   : > { %v538_v16 = vadd.f32 %v530_v8, %v522_v3  ;;  %v614_v18 = vcombine.low %v610_v5, %v611_v10  ;;  %v533_v21 = vmul.f32 %v493_v11, %v493_v11 }
 0x19f   : > { %v539_v19 = vadd.f32 %v531_v14, %v523_v12  ;;  %v540_v20 = vadd.f32 %v532_v15, %v524_v13 }
 0x1a0   : > { %860 = vrsqrt.f32 %v538_v16  ;;  %v387_v22 = vpop.f32.mrb[12].mxu1  ;;  %v621_v25 = vrot.slane %v614_v18, %v620_v17  ;;  %v541_v27 = vadd.f32 %v533_v21, %v525_v23  ;;  %vm548_vm4 = vcmp.eq.f32.partialorder %v538_v16, inf }
 0x1a1   : > { %862 = vrsqrt.f32 %v539_v19  ;;  %v389_v24 = vpop.f32.mrb[13].mxu1  ;;  %v497_v28 = vadd.f32 %v1111_v37, %v387_v22  ;;  %vm550_vm5 = vcmp.eq.f32.partialorder %v538_v16, 0.0  ;;  %v551_v49 = vand.u32 2147483648, %v538_v16 }
 0x1a2   : > { %864 = vrsqrt.f32 %v540_v20  ;;  %v391_v26 = vpop.f32.mrb[14].mxu1  ;;  %v499_v29 = vadd.f32 %v1113_v38, %v389_v24  ;;  %v628_v32 = vrot.slane %v621_v25, %v620_v17  ;;  %vm555_vm6 = vcmp.eq.f32.partialorder %v539_v19, inf }
 0x1a3   : > { %v393_v30 = vpop.f32.mrb[15].mxu1  ;;  %v501_v33 = vadd.f32 %v1115_v39, %v391_v26  ;;  %866 = vrsqrt.f32 %v541_v27  ;;  %v534_v42 = vmul.f32 %v497_v28, %v497_v28  ;;  %vm557_vm7 = vcmp.eq.f32.partialorder %v539_v19, 0.0 }
 0x1a4   : > { %v503_v34 = vadd.f32 %v1117_v40, %v393_v30  ;;  %761 = vst.msk [vmem:[%s1127_s29 + $0x40] ss:$8 sm:$0x3] %vm632_vm3, %v628_v32  ;;  %v535_v43 = vmul.f32 %v499_v29, %v499_v29  ;;  %v558_v53 = vand.u32 2147483648, %v539_v19  ;;  %vm562_vm8 = vcmp.eq.f32.partialorder %v540_v20, inf }
 0x1a5   : > { %v536_v44 = vmul.f32 %v501_v33, %v501_v33  ;;  %v542_v46 = vadd.f32 %v534_v42, %v526_v31  ;;  %v565_v57 = vand.u32 2147483648, %v540_v20  ;;  %vm564_vm9 = vcmp.eq.f32.partialorder %v540_v20, 0.0 }
 0x1a6   : > { %v537_v45 = vmul.f32 %v503_v34, %v503_v34  ;;  %v543_v37 = vadd.f32 %v535_v43, %v527_v35  ;;  %vm569_vm10 = vcmp.eq.f32.partialorder %v541_v27, inf  ;;  %v572_v63 = vand.u32 2147483648, %v541_v27 }
 0x1a7   : > { %v1134_v47 = vadd.f32 %v536_v44, %v528_v36  ;;  %868 = vrsqrt.f32 %v542_v46  ;;  %vm571_vm11 = vcmp.eq.f32.partialorder %v541_v27, 0.0  ;;  %vm576_vm12 = vcmp.eq.f32.partialorder %v542_v46, inf }
 0x1a8   : > { %v1136_v38 = vadd.f32 %v537_v45, %v529_v41  ;;  %870 = vrsqrt.f32 %v543_v37  ;;  %vm578_vm13 = vcmp.eq.f32.partialorder %v542_v46, 0.0  ;;  %v579_v6 = vand.u32 2147483648, %v542_v46 }
 0x1a9   : > { %872 = vrsqrt.f32 %v1134_v47  ;;  %vm583_vm14 = vcmp.eq.f32.partialorder %v543_v37, inf  ;;  %vm585_vm15 = vcmp.eq.f32.partialorder %v543_v37, 0.0  ;;  %v586_v9 = vand.u32 2147483648, %v543_v37 }
 0x1aa   : > { %v861_v48 = vpop.eup %860  ;;  %874 = vrsqrt.f32 %v1136_v38  ;;  %vm590_vm0 = vcmp.eq.f32.partialorder %v1134_v47, inf  ;;  %v593_v14 = vand.u32 2147483648, %v1134_v47  ;;  %vm592_vm1 = vcmp.eq.f32.partialorder %v1134_v47, 0.0 }
 0x1ab   : > { %v863_v39 = vpop.eup %862  ;;  %v547_v40 = vmul.f32 %v861_v48, %v538_v16  ;;  %vm597_vm2 = vcmp.eq.f32.partialorder %v1136_v38, inf  ;;  %vm599_vm3 = vcmp.eq.f32.partialorder %v1136_v38, 0.0 }
 0x1ac   : > { %v865_v50 = vpop.eup %864  ;;  %v554_v51 = vmul.f32 %v863_v39, %v539_v19 }
 0x1ad   : > { %v549_v52 = vsel %vm548_vm4, %v538_v16, %v547_v40  ;;  %v561_v54 = vmul.f32 %v865_v50, %v540_v20  ;;  %v867_v58 = vpop.eup %866 }
 0x1ae   : > { %v552_v55 = vsel %vm550_vm5, %v551_v49, %v549_v52  ;;  %v556_v56 = vsel %vm555_vm6, %v539_v19, %v554_v51  ;;  %v568_v62 = vmul.f32 %v867_v58, %v541_v27  ;;  %v600_v19 = vand.u32 2147483648, %v1136_v38 }
 0x1af   : > { %602 = vst [vmem:[%s1127_s29] sm:$0xff] %v552_v55  ;;  %v559_v59 = vsel %vm557_vm7, %v558_v53, %v556_v56  ;;  %v563_v60 = vsel %vm562_vm8, %v540_v20, %v561_v54 }
 0x1b0   : > { %603 = vst [vmem:[%s1127_s29 + $0x8] sm:$0xff] %v559_v59  ;;  %v566_v61 = vsel %vm564_vm9, %v565_v57, %v563_v60  ;;  %v570_v0 = vsel %vm569_vm10, %v541_v27, %v568_v62 }
 0x1b1   : > { %604 = vst [vmem:[%s1127_s29 + $0x10] sm:$0xff] %v566_v61  ;;  %v573_v1 = vsel %vm571_vm11, %v572_v63, %v570_v0  ;;  %v869_v2 = vpop.eup %868 }
 0x1b2   : > { %605 = vst [vmem:[%s1127_s29 + $0x18] sm:$0xff] %v573_v1  ;;  %v871_v3 = vpop.eup %870  ;;  %v575_v4 = vmul.f32 %v869_v2, %v542_v46 }
 0x1b3   : > { %v873_v5 = vpop.eup %872  ;;  %v582_v7 = vmul.f32 %v871_v3, %v543_v37 }
 0x1b4   : > { %v577_v8 = vsel %vm576_vm12, %v542_v46, %v575_v4  ;;  %v589_v10 = vmul.f32 %v873_v5, %v1134_v47  ;;  %v875_v11 = vpop.eup %874 }
 0x1b5   : > { %v580_v12 = vsel %vm578_vm13, %v579_v6, %v577_v8  ;;  %v584_v13 = vsel %vm583_vm14, %v543_v37, %v582_v7  ;;  %v596_v17 = vmul.f32 %v875_v11, %v1136_v38 }
 0x1b6   : > { %606 = vst [vmem:[%s1127_s29 + $0x20] sm:$0xff] %v580_v12  ;;  %v587_v15 = vsel %vm585_vm15, %v586_v9, %v584_v13  ;;  %v591_v16 = vsel %vm590_vm0, %v1134_v47, %v589_v10 }
 0x1b7   : > { %607 = vst [vmem:[%s1127_s29 + $0x28] sm:$0xff] %v587_v15  ;;  %v594_v18 = vsel %vm592_vm1, %v593_v14, %v591_v16  ;;  %v598_v20 = vsel %vm597_vm2, %v1136_v38, %v596_v17 }
 0x1b8   : > { %608 = vst [vmem:[%s1127_s29 + $0x30] sm:$0xff] %v594_v18  ;;  %v601_v21 = vsel %vm599_vm3, %v600_v19, %v598_v20 }
 0x1b9   : > { %609 = vst [vmem:[%s1127_s29 + $0x38] sm:$0xff] %v601_v21 }
 0x1ba PF: > { %s16_s17 = sadd.s32 1, %s956_s17   ;;  %s1182_s12 = smov %s940_s13 }
 0x1bb   : > { %p13_p9 = scmp.ge.s32.totalorder %s16_s17, 4   ;;  %s1183_s13 = smov %s944_s14 }
 0x1bc   : > { %s1184_s14 = smov %s1029_s23  ;;  %s1185_s15 = smov %s952_s16 }
 0x1bd   : > { %s1186_s16 = smov %s1188_s19  ;;  %15 = sbr.rel (!%p13_p9) target bundleno = 4 (0x4), region = 73 }
 0x1c4   :  { %667 = vsyncpa [#allocation3], 1 }
 0x1c5   :  { %669 = vsyncpa [#allocation3 + $0x1], 1 }

</bundles_post_ra>
